<compile_context>
chip_gen: v7x
topology: tpu7x:2x2x1
jax: 0.10.0
libtpu: 0.0.40
codegen_flags: <defaults>
</compile_context>

<pallas_src>
import jax
import jax.numpy as jnp
from jax.experimental import pallas as pl
from jax.experimental.pallas import tpu as pltpu

NEG_SLOPE = 0.01  # PyTorch nn.LeakyReLU default


def _leaky_relu(x):
    # For 0 < slope < 1, leaky_relu(x) == max(x, slope*x): mul+max (2 VALU ops)
    # instead of cmp+mul+select (3) that jnp.where lowers to.
    return jnp.maximum(x, NEG_SLOPE * x)


def _round_up(n, m):
    return ((n + m - 1) // m) * m


# ----------------------------- kernels --------------------------------------


def anchorhead_resident_kernel(x_ref, w1_ref, w2_ref, o_ref):
    # x_ref:  (TM, Dp)  streamed batch tile (double-buffered by Pallas)
    # w1_ref: (Dp, Hp)  VMEM-resident (constant index_map)
    # w2_ref: (Hp, Dp)  VMEM-resident
    # o_ref:  (TM, Dp)
    x = x_ref[...]
    h = jnp.dot(x, w1_ref[...], preferred_element_type=jnp.float32)
    # Cast before the activation: bf16 VALU on v6e/v7x, halves live vregs;
    # no-op for f32 inputs.
    h = _leaky_relu(h.astype(x_ref.dtype))
    y = jnp.dot(h, w2_ref[...], preferred_element_type=jnp.float32)
    o_ref[...] = _leaky_relu(y.astype(o_ref.dtype))


def anchorhead_htiled_kernel(x_ref, w1_ref, w2_ref, o_ref, acc_ref):
    # Grid = (m, h). The h axis is N-tiling for the first matmul and the
    # K-reduction for the second; acc_ref is a (TM, Dp) f32 accumulator.
    hk = pl.program_id(1)

    @pl.when(hk == 0)
    def _():
        acc_ref[...] = jnp.zeros_like(acc_ref)

    x = x_ref[...]
    h = jnp.dot(x, w1_ref[...], preferred_element_type=jnp.float32)
    h = _leaky_relu(h.astype(x_ref.dtype))          # elementwise -> per-slice OK
    acc_ref[...] += jnp.dot(h, w2_ref[...], preferred_element_type=jnp.float32)

    @pl.when(hk == pl.num_programs(1) - 1)
    def _():
        o_ref[...] = _leaky_relu(acc_ref[...]).astype(o_ref.dtype)


# --------------------------- wrapper / tiling --------------------------------


def _physical_vmem_bytes():
    try:
        return int(pltpu.get_tpu_info().vmem_capacity_bytes)
    except Exception:
        return 64 * 1024 * 1024  # conservative: v7x per-TensorCore VMEM


# Cached capability flag for pipeline_mode=pl.Buffered(1) on the weight specs.
_SINGLE_BUFFER_WEIGHTS_OK = [True]


def _weight_spec(block_shape, index_map, single_buffer):
    if single_buffer:
        return pl.BlockSpec(block_shape, index_map, pipeline_mode=pl.Buffered(1))
    return pl.BlockSpec(block_shape, index_map)


def _anchorhead_forward_impl(x, w1, w2, *, block_m, block_h, single_buffer_weights):
    B, D = x.shape
    H = w1.shape[1]
    assert w1.shape == (D, H) and w2.shape == (H, D)

    itemsize = jnp.dtype(x.dtype).itemsize
    sub = 16 if x.dtype == jnp.bfloat16 else 8

    # Feature dims: lane-align to 128 (full MXU contraction depth, unmasked vst).
    D_p = _round_up(D, 128)
    H_p = _round_up(H, 128)

    # Batch: pad only to the sublane multiple (cheap, often a no-op). The last
    # grid tile may be partial; Pallas masks out-of-bounds rows on read/write.
    B_p = _round_up(B, sub)

    TM = min(_round_up(block_m, sub), B_p)
    # Guarantee >= 2 grid steps for megacore sharding (v7x) on big batches.
    if B_p >= 256 and pl.cdiv(B_p, TM) < 2:
        TM = _round_up(pl.cdiv(B_p, 2), sub)
    grid_m = pl.cdiv(B_p, TM)

    vmem_phys = _physical_vmem_bytes()
    vmem_cap = (vmem_phys * 7) // 8          # headroom for compiler scratch/sems

    weight_buf_factor = 1 if single_buffer_weights else 2
    resident_weight_bytes = weight_buf_factor * 2 * D_p * H_p * itemsize
    stream_bytes = 4 * TM * D_p * itemsize   # double-buffered x + out tiles
    interm_bytes = 4 * TM * (H_p + D_p)      # f32 intermediates (spill margin)
    margin = 4 * 1024 * 1024

    # Resident-weight path vs H-tiled fallback (needed on v7x at large D*H).
    use_tiled_h = (block_h is not None) or (
        resident_weight_bytes + stream_bytes + interm_bytes + margin > vmem_cap)

    if use_tiled_h:
        TH = block_h if block_h is not None else 512
        TH = max(128, _round_up(min(TH, H_p), 128))
        H_pp = _round_up(H_p, TH)
        grid_h = H_pp // TH
        weight_bytes = 2 * 2 * D_p * TH * itemsize    # double-buffered W1/W2 tiles
        acc_bytes = 4 * TM * D_p
    else:
        TH = H_p
        H_pp = H_p
        grid_h = 1
        weight_bytes = resident_weight_bytes
        acc_bytes = 0

    needed = weight_bytes + stream_bytes + interm_bytes + acc_bytes + margin
    vmem_limit = int(min(vmem_cap, max(needed, 32 * 1024 * 1024)))

    # Zero-pad (leaky_relu(0) == 0, so padded lanes/rows stay zero end-to-end).
    x_p = x if (B_p, D_p) == (B, D) else (
        jnp.zeros((B_p, D_p), x.dtype).at[:B, :D].set(x))
    w1_p = w1 if (D_p, H_pp) == (D, H) else (
        jnp.zeros((D_p, H_pp), w1.dtype).at[:D, :H].set(w1))
    w2_p = w2 if (H_pp, D_p) == (H, D) else (
        jnp.zeros((H_pp, D_p), w2.dtype).at[:H, :D].set(w2))

    cost = pl.CostEstimate(
        flops=4 * B_p * D_p * H_pp,
        transcendentals=0,
        bytes_accessed=(2 * B_p * D_p + 2 * D_p * H_pp) * itemsize,
    )

    if not use_tiled_h:
        call = pl.pallas_call(
            anchorhead_resident_kernel,
            out_shape=jax.ShapeDtypeStruct((B_p, D_p), x.dtype),
            grid_spec=pltpu.PrefetchScalarGridSpec(
                num_scalar_prefetch=0,
                grid=(grid_m,),
                in_specs=[
                    pl.BlockSpec((TM, D_p), lambda i: (i, 0)),          # streamed x
                    _weight_spec((D_p, H_p), lambda i: (0, 0),
                                 single_buffer_weights),                # W1 resident
                    _weight_spec((H_p, D_p), lambda i: (0, 0),
                                 single_buffer_weights),                # W2 resident
                ],
                out_specs=pl.BlockSpec((TM, D_p), lambda i: (i, 0)),
            ),
            compiler_params=pltpu.CompilerParams(
                dimension_semantics=("parallel",),
                vmem_limit_bytes=vmem_limit,
            ),
            cost_estimate=cost,
        )
    else:
        call = pl.pallas_call(
            anchorhead_htiled_kernel,
            out_shape=jax.ShapeDtypeStruct((B_p, D_p), x.dtype),
            grid_spec=pltpu.PrefetchScalarGridSpec(
                num_scalar_prefetch=0,
                grid=(grid_m, grid_h),
                in_specs=[
                    pl.BlockSpec((TM, D_p), lambda i, k: (i, 0)),   # x (held per m)
                    pl.BlockSpec((D_p, TH), lambda i, k: (0, k)),   # W1 column tile
                    pl.BlockSpec((TH, D_p), lambda i, k: (k, 0)),   # W2 row tile
                ],
                out_specs=pl.BlockSpec((TM, D_p), lambda i, k: (i, 0)),
                scratch_shapes=[pltpu.VMEM((TM, D_p), jnp.float32)],
            ),
            compiler_params=pltpu.CompilerParams(
                dimension_semantics=("parallel", "arbitrary"),
                vmem_limit_bytes=vmem_limit,
            ),
            cost_estimate=cost,
        )

    out_p = call(x_p, w1_p, w2_p)
    if (B_p, D_p) == (B, D):
        return out_p
    return out_p[:B, :D]


def anchorhead_forward(x, w1, w2, *, block_m=512, block_h=None):
    """x: [B, D], w1: [D, H], w2: [H, D] -> [B, D]."""
    if _SINGLE_BUFFER_WEIGHTS_OK[0]:
        try:
            return _anchorhead_forward_impl(
                x, w1, w2, block_m=block_m, block_h=block_h,
                single_buffer_weights=True)
        except Exception:
            # pipeline_mode=pl.Buffered(1) not supported by this build; fall
            # back to the default double-buffered weight windows.
            _SINGLE_BUFFER_WEIGHTS_OK[0] = False
    return _anchorhead_forward_impl(
        x, w1, w2, block_m=block_m, block_h=block_h, single_buffer_weights=False)


# --------------------------- reference / tests --------------------------------


def xavier_uniform(key, fan_in, fan_out, shape):
    # torch.nn.init.xavier_uniform_: U(-a, a), a = sqrt(6 / (fan_in + fan_out))
    bound = jnp.sqrt(6.0 / (fan_in + fan_out))
    return jax.random.uniform(key, shape, minval=-bound, maxval=bound,
                              dtype=jnp.float32)


def reference_forward(x, w1, w2):
    h = _leaky_relu(x @ w1)
    return _leaky_relu(h @ w2)


def _run_case(key, B, D, reduction, **kwargs):
    k_x, k_w1, k_w2 = jax.random.split(key, 3)
    H = D // reduction
    x = jax.random.normal(k_x, (B, D), dtype=jnp.float32)
    # PyTorch Linear weight has shape (out, in); we store the transpose (in, out)
    # so the kernel does x @ W. Xavier bound depends only on fan sums, so
    # sampling directly in (in, out) layout is equivalent.
    w1 = xavier_uniform(k_w1, fan_in=D, fan_out=H, shape=(D, H))   # Linear(D, H)
    w2 = xavier_uniform(k_w2, fan_in=H, fan_out=D, shape=(H, D))   # Linear(H, D)

    out = jax.block_until_ready(anchorhead_forward(x, w1, w2, **kwargs))
    ref = reference_forward(x, w1, w2)
    assert out.shape == (B, D)
    assert jnp.allclose(out, ref, atol=1e-4, rtol=1e-4), \
        f"mismatch vs. JAX reference (B={B}, D={D}, kwargs={kwargs})"


if __name__ == "__main__":
    key = jax.random.PRNGKey(0)
    k1, k2, k3, k4 = jax.random.split(key, 4)

    # Tiny shape matching the PyTorch module defaults (feature dims are padded
    # to 128 lanes internally; single grid step, resident weights).
    _run_case(k1, B=8, D=32, reduction=2)

    # Ragged batch: padded only to the sublane multiple, not to the tile size.
    _run_case(k2, B=100, D=64, reduction=2)

    # Multi-tile batch with a partial last tile and VMEM-resident weights.
    _run_case(k3, B=640, D=256, reduction=2, block_m=512)

    # Force the H-tiled accumulator path (used when weights would not fit the
    # per-generation VMEM budget, e.g. large D on v7x).
    _run_case(k4, B=128, D=512, reduction=2, block_h=128)

    print("KERNEL_OK")
</pallas_src>

<mosaic_0001>
module attributes {stable_mosaic.version = 11 : i64} {
  func.func @anchorhead_resident_kernel(%arg0: i32, %arg1: memref<8x128xf32, #tpu.memory_space<vmem>>, %arg2: memref<128x128xf32, #tpu.memory_space<vmem>>, %arg3: memref<128x128xf32, #tpu.memory_space<vmem>>, %arg4: memref<8x128xf32, #tpu.memory_space<vmem>>) attributes {dimension_semantics = [#tpu.dimension_semantics<parallel>], iteration_bounds = array<i64: 1>, scalar_prefetch = 0 : i64, scratch_operands = 0 : i64, tpu.core_type = #tpu.core_type<tc>, window_params = [{transform_indices = @transform_0, window_bounds = array<i64: 8, 128>}, {pipeline_mode = #tpu.pipeline_mode<synchronous>, transform_indices = @transform_1, window_bounds = array<i64: 128, 128>}, {pipeline_mode = #tpu.pipeline_mode<synchronous>, transform_indices = @transform_2, window_bounds = array<i64: 128, 128>}, {transform_indices = @transform_3, window_bounds = array<i64: 8, 128>}]} {
    %c0 = arith.constant 0 : index
    %c0_0 = arith.constant 0 : index
    %0 = vector.load %arg1[%c0, %c0_0] : memref<8x128xf32, #tpu.memory_space<vmem>>, vector<8x128xf32>
    %c0_1 = arith.constant 0 : index
    %c0_2 = arith.constant 0 : index
    %1 = vector.load %arg2[%c0_1, %c0_2] : memref<128x128xf32, #tpu.memory_space<vmem>>, vector<128x128xf32>
    %cst = arith.constant dense<0.000000e+00> : vector<8x128xf32>
    %2 = tpu.matmul %0, %1, %cst {dimension_numbers = #tpu.dot_dimension_numbers<[1], [0], [0], [1], [0, 0, 1, 1], [], []>} : vector<8x128xf32>, vector<128x128xf32>, vector<8x128xf32> -> vector<8x128xf32>
    %cst_3 = arith.constant 0.00999999977 : f32
    %3 = vector.broadcast %cst_3 : f32 to vector<8x128xf32>
    %4 = arith.mulf %3, %2 : vector<8x128xf32>
    %5 = arith.maximumf %2, %4 : vector<8x128xf32>
    %c0_4 = arith.constant 0 : index
    %c0_5 = arith.constant 0 : index
    %6 = vector.load %arg3[%c0_4, %c0_5] : memref<128x128xf32, #tpu.memory_space<vmem>>, vector<128x128xf32>
    %cst_6 = arith.constant dense<0.000000e+00> : vector<8x128xf32>
    %7 = tpu.matmul %5, %6, %cst_6 {dimension_numbers = #tpu.dot_dimension_numbers<[1], [0], [0], [1], [0, 0, 1, 1], [], []>} : vector<8x128xf32>, vector<128x128xf32>, vector<8x128xf32> -> vector<8x128xf32>
    %cst_7 = arith.constant 0.00999999977 : f32
    %8 = vector.broadcast %cst_7 : f32 to vector<8x128xf32>
    %9 = arith.mulf %8, %7 : vector<8x128xf32>
    %10 = arith.maximumf %7, %9 : vector<8x128xf32>
    %c0_8 = arith.constant 0 : index
    %c0_9 = arith.constant 0 : index
    %11 = vector.load %arg4[%c0_8, %c0_9] : memref<8x128xf32, #tpu.memory_space<vmem>>, vector<8x128xf32>
    tpu.vector_store %arg4[%c0_8, %c0_9], %10 {strides = array<i32>} : memref<8x128xf32, #tpu.memory_space<vmem>>, vector<8x128xf32>,
    return
  }
  func.func @transform_0(%arg0: i32) -> (i32, i32) {
    %c0_i32 = arith.constant 0 : i32
    %c0_i32_0 = arith.constant 0 : i32
    return %arg0, %c0_i32 : i32, i32
  }
  func.func @transform_1(%arg0: i32) -> (i32, i32) {
    %c0_i32 = arith.constant 0 : i32
    %c0_i32_0 = arith.constant 0 : i32
    %c0_i32_1 = arith.constant 0 : i32
    return %c0_i32, %c0_i32_0 : i32, i32
  }
  func.func @transform_2(%arg0: i32) -> (i32, i32) {
    %c0_i32 = arith.constant 0 : i32
    %c0_i32_0 = arith.constant 0 : i32
    %c0_i32_1 = arith.constant 0 : i32
    return %c0_i32, %c0_i32_0 : i32, i32
  }
  func.func @transform_3(%arg0: i32) -> (i32, i32) {
    %c0_i32 = arith.constant 0 : i32
    %c0_i32_0 = arith.constant 0 : i32
    return %arg0, %c0_i32 : i32, i32
  }
}

module attributes {stable_mosaic.version = 11 : i64} {
  func.func @anchorhead_resident_kernel(%arg0: i32, %arg1: memref<8x128xf32, #tpu.memory_space<vmem>>, %arg2: memref<128x128xf32, #tpu.memory_space<vmem>>, %arg3: memref<128x128xf32, #tpu.memory_space<vmem>>, %arg4: memref<8x128xf32, #tpu.memory_space<vmem>>) attributes {dimension_semantics = [#tpu.dimension_semantics<parallel>], iteration_bounds = array<i64: 1>, scalar_prefetch = 0 : i64, scratch_operands = 0 : i64, tpu.core_type = #tpu.core_type<tc>, window_params = [{transform_indices = @transform_0, window_bounds = array<i64: 8, 128>}, {pipeline_mode = #tpu.pipeline_mode<synchronous>, transform_indices = @transform_1, window_bounds = array<i64: 128, 128>}, {pipeline_mode = #tpu.pipeline_mode<synchronous>, transform_indices = @transform_2, window_bounds = array<i64: 128, 128>}, {transform_indices = @transform_3, window_bounds = array<i64: 8, 128>}]} {
    %c0 = arith.constant 0 : index
    %c0_0 = arith.constant 0 : index
    %0 = vector.load %arg1[%c0, %c0_0] : memref<8x128xf32, #tpu.memory_space<vmem>>, vector<8x128xf32>
    %c0_1 = arith.constant 0 : index
    %c0_2 = arith.constant 0 : index
    %1 = vector.load %arg2[%c0_1, %c0_2] : memref<128x128xf32, #tpu.memory_space<vmem>>, vector<128x128xf32>
    %cst = arith.constant dense<0.000000e+00> : vector<8x128xf32>
    %2 = tpu.matmul %0, %1, %cst {dimension_numbers = #tpu.dot_dimension_numbers<[1], [0], [0], [1], [0, 0, 1, 1], [], []>} : vector<8x128xf32>, vector<128x128xf32>, vector<8x128xf32> -> vector<8x128xf32>
    %cst_3 = arith.constant 0.00999999977 : f32
    %3 = vector.broadcast %cst_3 : f32 to vector<8x128xf32>
    %4 = arith.mulf %3, %2 : vector<8x128xf32>
    %5 = arith.maximumf %2, %4 : vector<8x128xf32>
    %c0_4 = arith.constant 0 : index
    %c0_5 = arith.constant 0 : index
    %6 = vector.load %arg3[%c0_4, %c0_5] : memref<128x128xf32, #tpu.memory_space<vmem>>, vector<128x128xf32>
    %cst_6 = arith.constant dense<0.000000e+00> : vector<8x128xf32>
    %7 = tpu.matmul %5, %6, %cst_6 {dimension_numbers = #tpu.dot_dimension_numbers<[1], [0], [0], [1], [0, 0, 1, 1], [], []>} : vector<8x128xf32>, vector<128x128xf32>, vector<8x128xf32> -> vector<8x128xf32>
    %cst_7 = arith.constant 0.00999999977 : f32
    %8 = vector.broadcast %cst_7 : f32 to vector<8x128xf32>
    %9 = arith.mulf %8, %7 : vector<8x128xf32>
    %10 = arith.maximumf %7, %9 : vector<8x128xf32>
    %c0_8 = arith.constant 0 : index
    %c0_9 = arith.constant 0 : index
    %11 = vector.load %arg4[%c0_8, %c0_9] : memref<8x128xf32, #tpu.memory_space<vmem>>, vector<8x128xf32>
    tpu.vector_store %arg4[%c0_8, %c0_9], %10 {strides = array<i32>} : memref<8x128xf32, #tpu.memory_space<vmem>>, vector<8x128xf32>,
    return
  }
  func.func @transform_0(%arg0: i32) -> (i32, i32) {
    %c0_i32 = arith.constant 0 : i32
    %c0_i32_0 = arith.constant 0 : i32
    return %arg0, %c0_i32 : i32, i32
  }
  func.func @transform_1(%arg0: i32) -> (i32, i32) {
    %c0_i32 = arith.constant 0 : i32
    %c0_i32_0 = arith.constant 0 : i32
    %c0_i32_1 = arith.constant 0 : i32
    return %c0_i32, %c0_i32_0 : i32, i32
  }
  func.func @transform_2(%arg0: i32) -> (i32, i32) {
    %c0_i32 = arith.constant 0 : i32
    %c0_i32_0 = arith.constant 0 : i32
    %c0_i32_1 = arith.constant 0 : i32
    return %c0_i32, %c0_i32_0 : i32, i32
  }
  func.func @transform_3(%arg0: i32) -> (i32, i32) {
    %c0_i32 = arith.constant 0 : i32
    %c0_i32_0 = arith.constant 0 : i32
    return %arg0, %c0_i32 : i32, i32
  }
}

</mosaic_0001>

<bundles_post_ra>
// kernel: tpu_custom_call.1
= control target key start
LH: loop header
LB: loop body
LE: loop exit
PB: predicated region body
PF: predicated region fallthrough
CT: control target
= control target key end

     0   :  { %8 = vsyncpa [#allocation3], 0  ;;  %s602_s0 = inlined_call_operand.hbm [shape: f32[8,128], index: 0, kind: input, shape index: {}]   ;;  %s603_s1 = inlined_call_operand.hbm [shape: f32[128,128], index: 1, kind: input, shape index: {}]   ;;  %s604_s2 = inlined_call_operand.hbm [shape: f32[128,128], index: 2, kind: input, shape index: {}]   ;;  %s605_s3 = inlined_call_operand.hbm [shape: f32[8,128], index: 3, kind: output, shape index: {}]  }
   0x1   :  { %9 = vsyncpa [#allocation6], 0 }
   0x2   :  { %10 = vsyncpa [#allocation4], 0  ;;  %s503_s12 = smov [#allocation5]   ;;  %s409_s16 = scalar_lea.hbm %s603_s1, 2048 }
   0x3   :  { %s26_s13 = sshll.u32 %s503_s12, 4  ;;  %p410_p0 = scmp.ne.s32.totalorder %s603_s1, %s409_s16  ;;  %s27_s13 = int_to_ptr.vmem [resolvable:$true] %s26_s13 }
   0x4   :  { %p413_p1 = scmp.lt.u32.totalorder %s409_s16, %s603_s1 }
   0x6   :  { %p415_p2 = pnand %p413_p1, %p410_p0 }
   0x8   :  { %418 = shalt.err (!%p415_p2)
}
   0x9   :  { %s419_s21 = scalar_lea.vmem %s27_s13, 2048  ;;  %p424_p4 = scmp.lt.s32.totalorder %s27_s13, %s27_s13 }
   0xa   :  { %p420_p3 = scmp.ne.s32.totalorder %s27_s13, %s419_s21  ;;  %p425_p5 = scmp.lt.s32.totalorder %s419_s21, %s419_s21 }
   0xc   :  { %p426_p6 = por %p425_p5, %p424_p4 }
   0xe   :  { %p427_p7 = pnand %p426_p6, %p420_p3 }
  0x10   :  { %430 = shalt.err (!%p427_p7)
}
  0x11   :  { %s504_s22 = smov 128   ;;  %s505_s23 = smov 8  }
  0x12   :  { %32 = dma.hbm_to_vmem [thread:$0]  %s603_s1, 2048, %s27_s13, [#allocation6], %s504_s22, %s504_s22, %s505_s23  }
  0x13   :  { %s506_s26 = smov [#allocation2]   ;;  %s507_s28 = smov [#allocation7]  }
  0x14   :  { %s17_s27 = sshll.u32 %s506_s26, 4  ;;  %s38_s29 = sshll.u32 %s507_s28, 4  ;;  %s18_s27 = int_to_ptr.vmem [resolvable:$true] %s17_s27  ;;  %s39_s29 = int_to_ptr.vmem [resolvable:$true] %s38_s29 }
  0x15   :  { %s431_s5 = scalar_lea.hbm %s602_s0, 128 }
  0x16   :  { %p432_p8 = scmp.ne.s32.totalorder %s602_s0, %s431_s5  ;;  %p435_p9 = scmp.lt.u32.totalorder %s431_s5, %s602_s0 }
  0x18   :  { %p437_p10 = pnand %p435_p9, %p432_p8 }
  0x1a   :  { %440 = shalt.err (!%p437_p10)
}
  0x1b   :  { %s441_s1 = scalar_lea.vmem %s18_s27, 128  ;;  %p446_p12 = scmp.lt.s32.totalorder %s18_s27, %s18_s27 }
  0x1c   :  { %p442_p11 = scmp.ne.s32.totalorder %s18_s27, %s441_s1  ;;  %p447_p13 = scmp.lt.s32.totalorder %s441_s1, %s441_s1 }
  0x1e   :  { %p448_p0 = por %p447_p13, %p446_p12 }
  0x20   :  { %p449_p1 = pnand %p448_p0, %p442_p11 }
  0x22   :  { %452 = shalt.err (!%p449_p1)
}
  0x23   :  { %20 = dma.hbm_to_vmem [thread:$0]  %s602_s0, 128, %s18_s27, [#allocation3]  }
  0x24   :  { %s453_s14 = scalar_lea.hbm %s604_s2, 2048 }
  0x25   :  { %p454_p2 = scmp.ne.s32.totalorder %s604_s2, %s453_s14  ;;  %p457_p3 = scmp.lt.u32.totalorder %s453_s14, %s604_s2 }
  0x27   :  { %p459_p4 = pnand %p457_p3, %p454_p2 }
  0x29   :  { %462 = shalt.err (!%p459_p4)
}
  0x2a   :  { %s463_s19 = scalar_lea.vmem %s39_s29, 2048  ;;  %p468_p6 = scmp.lt.s32.totalorder %s39_s29, %s39_s29 }
  0x2b   :  { %p464_p5 = scmp.ne.s32.totalorder %s39_s29, %s463_s19  ;;  %p469_p7 = scmp.lt.s32.totalorder %s463_s19, %s463_s19 }
  0x2d   :  { %p470_p8 = por %p469_p7, %p468_p6 }
  0x2f   :  { %p471_p9 = pnand %p470_p8, %p464_p5 }
  0x31   :  { %474 = shalt.err (!%p471_p9)
}
  0x32   :  { %44 = dma.hbm_to_vmem [thread:$0]  %s604_s2, 2048, %s39_s29, [#allocation6], %s504_s22, %s504_s22, %s505_s23  }
  0x33   :  { %497 = dma.done.wait [#allocation3], 128  }
  0x34   :  { %498 = vsyncadd [#allocation3], 4294967168 }
  0x35   :  { %499 = dma.done.wait [#allocation6], 4096  }
  0x36   :  { %500 = vsyncadd [#allocation6], 4294963200  ;;  %v508_v0 = vmov 0.0|0.0   ;;  %vm509_vm0 = vmmov 0   ;;  %v510_v1 = vmov 0.0   ;;  %v55_v2 = vld [vmem:[#allocation5] sm:$0xff] }
  0x37   :  { %352 = vmatprep.subr.bf16.mxu0 %v508_v0  ;;  %314 = vmatprep.mubr.msk.f32.mxu0 %vm509_vm0, %v510_v1  ;;  %v56_v3 = vld [vmem:[#allocation5 + $0x8] sm:$0xff]  ;;  %v57_v4 = vld [vmem:[#allocation5 + $0x10] sm:$0xff]  ;;  %v58_v6 = vld [vmem:[#allocation5 + $0x18] sm:$0xff]  ;;  %s511_s2 = smov [#allocation8]  }
  0x38   :  { %376 = vmatprep.subr.bf16.mxu1 %v508_v0  ;;  %349 = vmatprep.mubr.msk.f32.mxu1 %vm509_vm0, %v510_v1  ;;  %v353_v5 = vpack.c.bf16 %v56_v3, %v55_v2  ;;  %v356_v7 = vpack.c.bf16 %v58_v6, %v57_v4  ;;  %v59_v8 = vld [vmem:[#allocation5 + $0x20] sm:$0xff]  ;;  %v60_v9 = vld [vmem:[#allocation5 + $0x28] sm:$0xff]  ;;  %v145_v12 = vld [vmem:[#allocation7 + $0x10] sm:$0xff]  ;;  %s238_s21 = sshll.u32 %s511_s2, 4  ;;  %s239_s21 = int_to_ptr.vmem [resolvable:$true] %s238_s21 }
  0x39   :  { %v143_v10 = vld [vmem:[#allocation7] sm:$0xff]  ;;  %v144_v11 = vld [vmem:[#allocation7 + $0x8] sm:$0xff]  ;;  %v146_v13 = vld [vmem:[#allocation7 + $0x18] sm:$0xff]  ;;  %v359_v14 = vpack.c.bf16 %v60_v9, %v59_v8  ;;  %s475_s22 = scalar_lea.vmem %s239_s21, 128  ;;  %p480_p11 = scmp.lt.s32.totalorder %s239_s21, %s239_s21 }
  0x3a   :  { %354 = vmatpush3.bf16.msra.mxu0 %v353_v5  ;;  %v377_v15 = vpack.c.bf16 %v144_v11, %v143_v10  ;;  %v61_v16 = vld [vmem:[#allocation5 + $0x30] sm:$0xff]  ;;  %v62_v17 = vld [vmem:[#allocation5 + $0x38] sm:$0xff]  ;;  %v380_v18 = vpack.c.bf16 %v146_v13, %v145_v12  ;;  %v147_v19 = vld [vmem:[#allocation7 + $0x20] sm:$0xff]  ;;  %p476_p10 = scmp.ne.s32.totalorder %s239_s21, %s475_s22  ;;  %p481_p12 = scmp.lt.s32.totalorder %s475_s22, %s475_s22 }
  0x3b   :  { %355 = vmatprep.subr.bf16.mxu0 %v508_v0  ;;  %v148_v20 = vld [vmem:[#allocation7 + $0x28] sm:$0xff]  ;;  %v362_v21 = vpack.c.bf16 %v62_v17, %v61_v16  ;;  %v63_v22 = vld [vmem:[#allocation5 + $0x40] sm:$0xff]  ;;  %v149_v25 = vld [vmem:[#allocation7 + $0x30] sm:$0xff] }
  0x3c   :  { %378 = vmatpush3.bf16.msra.mxu1 %v377_v15  ;;  %v64_v23 = vld [vmem:[#allocation5 + $0x48] sm:$0xff]  ;;  %v383_v24 = vpack.c.bf16 %v148_v20, %v147_v19  ;;  %v150_v26 = vld [vmem:[#allocation7 + $0x38] sm:$0xff]  ;;  %v65_v28 = vld [vmem:[#allocation5 + $0x50] sm:$0xff]  ;;  %p482_p13 = por %p481_p12, %p480_p11 }
  0x3d   :  { %379 = vmatprep.subr.bf16.mxu1 %v508_v0  ;;  %v365_v27 = vpack.c.bf16 %v64_v23, %v63_v22  ;;  %v66_v29 = vld [vmem:[#allocation5 + $0x58] sm:$0xff]  ;;  %v386_v30 = vpack.c.bf16 %v150_v26, %v149_v25  ;;  %v151_v31 = vld [vmem:[#allocation7 + $0x40] sm:$0xff]  ;;  %v152_v32 = vld [vmem:[#allocation7 + $0x48] sm:$0xff] }
  0x3e   :  { %357 = vmatpush3.bf16.msra.mxu0 %v356_v7  ;;  %v368_v33 = vpack.c.bf16 %v66_v29, %v65_v28  ;;  %v67_v34 = vld [vmem:[#allocation5 + $0x60] sm:$0xff]  ;;  %v68_v35 = vld [vmem:[#allocation5 + $0x68] sm:$0xff]  ;;  %v389_v36 = vpack.c.bf16 %v152_v32, %v151_v31  ;;  %v153_v37 = vld [vmem:[#allocation7 + $0x50] sm:$0xff]  ;;  %p483_p0 = pnand %p482_p13, %p476_p10 }
  0x3f   :  { %358 = vmatprep.subr.bf16.mxu0 %v508_v0  ;;  %v154_v38 = vld [vmem:[#allocation7 + $0x58] sm:$0xff]  ;;  %v371_v39 = vpack.c.bf16 %v68_v35, %v67_v34  ;;  %v69_v40 = vld [vmem:[#allocation5 + $0x70] sm:$0xff]  ;;  %v155_v43 = vld [vmem:[#allocation7 + $0x60] sm:$0xff] }
  0x40   :  { %381 = vmatpush3.bf16.msra.mxu1 %v380_v18  ;;  %v70_v41 = vld [vmem:[#allocation5 + $0x78] sm:$0xff]  ;;  %v392_v42 = vpack.c.bf16 %v154_v38, %v153_v37  ;;  %v156_v44 = vld [vmem:[#allocation7 + $0x68] sm:$0xff]  ;;  %v157_v48 = vld [vmem:[#allocation7 + $0x70] sm:$0xff] }
  0x41   :  { %382 = vmatprep.subr.bf16.mxu1 %v508_v0  ;;  %v374_v45 = vpack.c.bf16 %v70_v41, %v69_v40  ;;  %v395_v46 = vpack.c.bf16 %v156_v44, %v155_v43  ;;  %v54_v47 = vld [vmem:[#allocation2] sm:$0xff] }
  0x42   :  { %360 = vmatpush3.bf16.msra.mxu0 %v359_v14  ;;  %v158_v49 = vld [vmem:[#allocation7 + $0x78] sm:$0xff] }
  0x43   :  { %361 = vmatprep.subr.bf16.mxu0 %v508_v0  ;;  %v398_v50 = vpack.c.bf16 %v158_v49, %v157_v48 }
  0x44   :  { %384 = vmatpush3.bf16.msra.mxu1 %v383_v24 }
  0x45   :  { %385 = vmatprep.subr.bf16.mxu1 %v508_v0 }
  0x46   :  { %363 = vmatpush3.bf16.msra.mxu0 %v362_v21 }
  0x47   :  { %364 = vmatprep.subr.bf16.mxu0 %v508_v0 }
  0x48   :  { %387 = vmatpush3.bf16.msra.mxu1 %v386_v30 }
  0x49   :  { %388 = vmatprep.subr.bf16.mxu1 %v508_v0 }
  0x4a   :  { %366 = vmatpush3.bf16.msra.mxu0 %v365_v27 }
  0x4b   :  { %367 = vmatprep.subr.bf16.mxu0 %v508_v0 }
  0x4c   :  { %390 = vmatpush3.bf16.msra.mxu1 %v389_v36 }
  0x4d   :  { %391 = vmatprep.subr.bf16.mxu1 %v508_v0 }
  0x4e   :  { %369 = vmatpush3.bf16.msra.mxu0 %v368_v33 }
  0x4f   :  { %370 = vmatprep.subr.bf16.mxu0 %v508_v0 }
  0x50   :  { %393 = vmatpush3.bf16.msra.mxu1 %v392_v42 }
  0x51   :  { %394 = vmatprep.subr.bf16.mxu1 %v508_v0 }
  0x52   :  { %372 = vmatpush3.bf16.msra.mxu0 %v371_v39 }
  0x53   :  { %373 = vmatprep.subr.bf16.mxu0 %v508_v0 }
  0x54   :  { %396 = vmatpush3.bf16.msra.mxu1 %v395_v46 }
  0x55   :  { %397 = vmatprep.subr.bf16.mxu1 %v508_v0 }
  0x56   :  { %375 = vmatpush3.bf16.msra.mxu0 %v374_v45 }
  0x58   :  { %399 = vmatpush3.bf16.msra.mxu1 %v398_v50 }
  0x59   :  { %315 = vmatmul.mubr.f32.vlgmr.msra.gmra.mrb[0].mxu0 %v54_v47 }
 0x12c   :  { %v137_v51 = vpop.f32.mrb[0].mxu0 }
 0x12d   :  { %v141_v52 = vmul.f32 0.01, %v137_v51  ;;  %v316_v53 = vpop.f32.mrb[1].mxu0 }
 0x12f   :  { %v142_v54 = vmax.f32 %v137_v51, %v141_v52 }
 0x131   :  { %350 = vmatmul.mubr.f32.vlgmr.msra.gmra.mrb[0].mxu1 %v142_v54 }
 0x204   :  { %v225_v55 = vpop.f32.mrb[0].mxu1 }
 0x205   :  { %v229_v56 = vmul.f32 0.01, %v225_v55  ;;  %v351_v57 = vpop.f32.mrb[1].mxu1 }
 0x207   :  { %v230_v58 = vmax.f32 %v225_v55, %v229_v56 }
 0x209   :  { %231 = vst [vmem:[#allocation8] sm:$0xff] %v230_v58 }
 0x20a   :  { %486 = shalt.err (!%p483_p0)
}
 0x20b   :  { %s487_s25 = scalar_lea.hbm %s605_s3, 128 }
 0x20c   :  { %p488_p1 = scmp.ne.s32.totalorder %s605_s3, %s487_s25  ;;  %p491_p2 = scmp.lt.u32.totalorder %s487_s25, %s605_s3 }
 0x20e   :  { %p493_p3 = pnand %p491_p2, %p488_p1 }
 0x210   :  { %496 = shalt.err (!%p493_p3)
}
 0x211   :  { %241 = dma.vmem_to_hbm [thread:$0]  %s239_s21, 128, %s605_s3, [#allocation4]  }
 0x212   :  { %501 = dma.done.wait [#allocation4], 128  }
 0x213   :  { %502 = vsyncadd [#allocation4], 4294967168 }
 0x214   :  { %245 = vsyncpa [#allocation3], 1 }
 0x215   :  { %246 = vsyncpa [#allocation6], 1 }
 0x216   :  { %247 = vsyncpa [#allocation4], 1 }

// kernel: tpu_custom_call.1
= control target key start
LH: loop header
LB: loop body
LE: loop exit
PB: predicated region body
PF: predicated region fallthrough
CT: control target
= control target key end

     0   :  { %8 = vsyncpa [#allocation3], 0  ;;  %s602_s0 = inlined_call_operand.hbm [shape: f32[8,128], index: 0, kind: input, shape index: {}]   ;;  %s603_s1 = inlined_call_operand.hbm [shape: f32[128,128], index: 1, kind: input, shape index: {}]   ;;  %s604_s2 = inlined_call_operand.hbm [shape: f32[128,128], index: 2, kind: input, shape index: {}]   ;;  %s605_s3 = inlined_call_operand.hbm [shape: f32[8,128], index: 3, kind: output, shape index: {}]  }
   0x1   :  { %9 = vsyncpa [#allocation6], 0 }
   0x2   :  { %10 = vsyncpa [#allocation4], 0  ;;  %s503_s12 = smov [#allocation5]   ;;  %s409_s16 = scalar_lea.hbm %s603_s1, 2048 }
   0x3   :  { %s26_s13 = sshll.u32 %s503_s12, 4  ;;  %p410_p0 = scmp.ne.s32.totalorder %s603_s1, %s409_s16  ;;  %s27_s13 = int_to_ptr.vmem [resolvable:$true] %s26_s13 }
   0x4   :  { %p413_p1 = scmp.lt.u32.totalorder %s409_s16, %s603_s1 }
   0x6   :  { %p415_p2 = pnand %p413_p1, %p410_p0 }
   0x8   :  { %418 = shalt.err (!%p415_p2)
}
   0x9   :  { %s419_s21 = scalar_lea.vmem %s27_s13, 2048  ;;  %p424_p4 = scmp.lt.s32.totalorder %s27_s13, %s27_s13 }
   0xa   :  { %p420_p3 = scmp.ne.s32.totalorder %s27_s13, %s419_s21  ;;  %p425_p5 = scmp.lt.s32.totalorder %s419_s21, %s419_s21 }
   0xc   :  { %p426_p6 = por %p425_p5, %p424_p4 }
   0xe   :  { %p427_p7 = pnand %p426_p6, %p420_p3 }
  0x10   :  { %430 = shalt.err (!%p427_p7)
}
  0x11   :  { %s504_s22 = smov 128   ;;  %s505_s23 = smov 8  }
  0x12   :  { %32 = dma.hbm_to_vmem [thread:$0]  %s603_s1, 2048, %s27_s13, [#allocation6], %s504_s22, %s504_s22, %s505_s23  }
  0x13   :  { %s506_s26 = smov [#allocation2]   ;;  %s507_s28 = smov [#allocation7]  }
  0x14   :  { %s17_s27 = sshll.u32 %s506_s26, 4  ;;  %s38_s29 = sshll.u32 %s507_s28, 4  ;;  %s18_s27 = int_to_ptr.vmem [resolvable:$true] %s17_s27  ;;  %s39_s29 = int_to_ptr.vmem [resolvable:$true] %s38_s29 }
  0x15   :  { %s431_s5 = scalar_lea.hbm %s602_s0, 128 }
  0x16   :  { %p432_p8 = scmp.ne.s32.totalorder %s602_s0, %s431_s5  ;;  %p435_p9 = scmp.lt.u32.totalorder %s431_s5, %s602_s0 }
  0x18   :  { %p437_p10 = pnand %p435_p9, %p432_p8 }
  0x1a   :  { %440 = shalt.err (!%p437_p10)
}
  0x1b   :  { %s441_s1 = scalar_lea.vmem %s18_s27, 128  ;;  %p446_p12 = scmp.lt.s32.totalorder %s18_s27, %s18_s27 }
  0x1c   :  { %p442_p11 = scmp.ne.s32.totalorder %s18_s27, %s441_s1  ;;  %p447_p13 = scmp.lt.s32.totalorder %s441_s1, %s441_s1 }
  0x1e   :  { %p448_p0 = por %p447_p13, %p446_p12 }
  0x20   :  { %p449_p1 = pnand %p448_p0, %p442_p11 }
  0x22   :  { %452 = shalt.err (!%p449_p1)
}
  0x23   :  { %20 = dma.hbm_to_vmem [thread:$0]  %s602_s0, 128, %s18_s27, [#allocation3]  }
  0x24   :  { %s453_s14 = scalar_lea.hbm %s604_s2, 2048 }
  0x25   :  { %p454_p2 = scmp.ne.s32.totalorder %s604_s2, %s453_s14  ;;  %p457_p3 = scmp.lt.u32.totalorder %s453_s14, %s604_s2 }
  0x27   :  { %p459_p4 = pnand %p457_p3, %p454_p2 }
  0x29   :  { %462 = shalt.err (!%p459_p4)
}
  0x2a   :  { %s463_s19 = scalar_lea.vmem %s39_s29, 2048  ;;  %p468_p6 = scmp.lt.s32.totalorder %s39_s29, %s39_s29 }
  0x2b   :  { %p464_p5 = scmp.ne.s32.totalorder %s39_s29, %s463_s19  ;;  %p469_p7 = scmp.lt.s32.totalorder %s463_s19, %s463_s19 }
  0x2d   :  { %p470_p8 = por %p469_p7, %p468_p6 }
  0x2f   :  { %p471_p9 = pnand %p470_p8, %p464_p5 }
  0x31   :  { %474 = shalt.err (!%p471_p9)
}
  0x32   :  { %44 = dma.hbm_to_vmem [thread:$0]  %s604_s2, 2048, %s39_s29, [#allocation6], %s504_s22, %s504_s22, %s505_s23  }
  0x33   :  { %497 = dma.done.wait [#allocation3], 128  }
  0x34   :  { %498 = vsyncadd [#allocation3], 4294967168 }
  0x35   :  { %499 = dma.done.wait [#allocation6], 4096  }
  0x36   :  { %500 = vsyncadd [#allocation6], 4294963200  ;;  %v508_v0 = vmov 0.0|0.0   ;;  %vm509_vm0 = vmmov 0   ;;  %v510_v1 = vmov 0.0   ;;  %v55_v2 = vld [vmem:[#allocation5] sm:$0xff] }
  0x37   :  { %352 = vmatprep.subr.bf16.mxu0 %v508_v0  ;;  %314 = vmatprep.mubr.msk.f32.mxu0 %vm509_vm0, %v510_v1  ;;  %v56_v3 = vld [vmem:[#allocation5 + $0x8] sm:$0xff]  ;;  %v57_v4 = vld [vmem:[#allocation5 + $0x10] sm:$0xff]  ;;  %v58_v6 = vld [vmem:[#allocation5 + $0x18] sm:$0xff]  ;;  %s511_s2 = smov [#allocation8]  }
  0x38   :  { %376 = vmatprep.subr.bf16.mxu1 %v508_v0  ;;  %349 = vmatprep.mubr.msk.f32.mxu1 %vm509_vm0, %v510_v1  ;;  %v353_v5 = vpack.c.bf16 %v56_v3, %v55_v2  ;;  %v356_v7 = vpack.c.bf16 %v58_v6, %v57_v4  ;;  %v59_v8 = vld [vmem:[#allocation5 + $0x20] sm:$0xff]  ;;  %v60_v9 = vld [vmem:[#allocation5 + $0x28] sm:$0xff]  ;;  %v145_v12 = vld [vmem:[#allocation7 + $0x10] sm:$0xff]  ;;  %s238_s21 = sshll.u32 %s511_s2, 4  ;;  %s239_s21 = int_to_ptr.vmem [resolvable:$true] %s238_s21 }
  0x39   :  { %v143_v10 = vld [vmem:[#allocation7] sm:$0xff]  ;;  %v144_v11 = vld [vmem:[#allocation7 + $0x8] sm:$0xff]  ;;  %v146_v13 = vld [vmem:[#allocation7 + $0x18] sm:$0xff]  ;;  %v359_v14 = vpack.c.bf16 %v60_v9, %v59_v8  ;;  %s475_s22 = scalar_lea.vmem %s239_s21, 128  ;;  %p480_p11 = scmp.lt.s32.totalorder %s239_s21, %s239_s21 }
  0x3a   :  { %354 = vmatpush3.bf16.msra.mxu0 %v353_v5  ;;  %v377_v15 = vpack.c.bf16 %v144_v11, %v143_v10  ;;  %v61_v16 = vld [vmem:[#allocation5 + $0x30] sm:$0xff]  ;;  %v62_v17 = vld [vmem:[#allocation5 + $0x38] sm:$0xff]  ;;  %v380_v18 = vpack.c.bf16 %v146_v13, %v145_v12  ;;  %v147_v19 = vld [vmem:[#allocation7 + $0x20] sm:$0xff]  ;;  %p476_p10 = scmp.ne.s32.totalorder %s239_s21, %s475_s22  ;;  %p481_p12 = scmp.lt.s32.totalorder %s475_s22, %s475_s22 }
  0x3b   :  { %355 = vmatprep.subr.bf16.mxu0 %v508_v0  ;;  %v148_v20 = vld [vmem:[#allocation7 + $0x28] sm:$0xff]  ;;  %v362_v21 = vpack.c.bf16 %v62_v17, %v61_v16  ;;  %v63_v22 = vld [vmem:[#allocation5 + $0x40] sm:$0xff]  ;;  %v149_v25 = vld [vmem:[#allocation7 + $0x30] sm:$0xff] }
  0x3c   :  { %378 = vmatpush3.bf16.msra.mxu1 %v377_v15  ;;  %v64_v23 = vld [vmem:[#allocation5 + $0x48] sm:$0xff]  ;;  %v383_v24 = vpack.c.bf16 %v148_v20, %v147_v19  ;;  %v150_v26 = vld [vmem:[#allocation7 + $0x38] sm:$0xff]  ;;  %v65_v28 = vld [vmem:[#allocation5 + $0x50] sm:$0xff]  ;;  %p482_p13 = por %p481_p12, %p480_p11 }
  0x3d   :  { %379 = vmatprep.subr.bf16.mxu1 %v508_v0  ;;  %v365_v27 = vpack.c.bf16 %v64_v23, %v63_v22  ;;  %v66_v29 = vld [vmem:[#allocation5 + $0x58] sm:$0xff]  ;;  %v386_v30 = vpack.c.bf16 %v150_v26, %v149_v25  ;;  %v151_v31 = vld [vmem:[#allocation7 + $0x40] sm:$0xff]  ;;  %v152_v32 = vld [vmem:[#allocation7 + $0x48] sm:$0xff] }
  0x3e   :  { %357 = vmatpush3.bf16.msra.mxu0 %v356_v7  ;;  %v368_v33 = vpack.c.bf16 %v66_v29, %v65_v28  ;;  %v67_v34 = vld [vmem:[#allocation5 + $0x60] sm:$0xff]  ;;  %v68_v35 = vld [vmem:[#allocation5 + $0x68] sm:$0xff]  ;;  %v389_v36 = vpack.c.bf16 %v152_v32, %v151_v31  ;;  %v153_v37 = vld [vmem:[#allocation7 + $0x50] sm:$0xff]  ;;  %p483_p0 = pnand %p482_p13, %p476_p10 }
  0x3f   :  { %358 = vmatprep.subr.bf16.mxu0 %v508_v0  ;;  %v154_v38 = vld [vmem:[#allocation7 + $0x58] sm:$0xff]  ;;  %v371_v39 = vpack.c.bf16 %v68_v35, %v67_v34  ;;  %v69_v40 = vld [vmem:[#allocation5 + $0x70] sm:$0xff]  ;;  %v155_v43 = vld [vmem:[#allocation7 + $0x60] sm:$0xff] }
  0x40   :  { %381 = vmatpush3.bf16.msra.mxu1 %v380_v18  ;;  %v70_v41 = vld [vmem:[#allocation5 + $0x78] sm:$0xff]  ;;  %v392_v42 = vpack.c.bf16 %v154_v38, %v153_v37  ;;  %v156_v44 = vld [vmem:[#allocation7 + $0x68] sm:$0xff]  ;;  %v157_v48 = vld [vmem:[#allocation7 + $0x70] sm:$0xff] }
  0x41   :  { %382 = vmatprep.subr.bf16.mxu1 %v508_v0  ;;  %v374_v45 = vpack.c.bf16 %v70_v41, %v69_v40  ;;  %v395_v46 = vpack.c.bf16 %v156_v44, %v155_v43  ;;  %v54_v47 = vld [vmem:[#allocation2] sm:$0xff] }
  0x42   :  { %360 = vmatpush3.bf16.msra.mxu0 %v359_v14  ;;  %v158_v49 = vld [vmem:[#allocation7 + $0x78] sm:$0xff] }
  0x43   :  { %361 = vmatprep.subr.bf16.mxu0 %v508_v0  ;;  %v398_v50 = vpack.c.bf16 %v158_v49, %v157_v48 }
  0x44   :  { %384 = vmatpush3.bf16.msra.mxu1 %v383_v24 }
  0x45   :  { %385 = vmatprep.subr.bf16.mxu1 %v508_v0 }
  0x46   :  { %363 = vmatpush3.bf16.msra.mxu0 %v362_v21 }
  0x47   :  { %364 = vmatprep.subr.bf16.mxu0 %v508_v0 }
  0x48   :  { %387 = vmatpush3.bf16.msra.mxu1 %v386_v30 }
  0x49   :  { %388 = vmatprep.subr.bf16.mxu1 %v508_v0 }
  0x4a   :  { %366 = vmatpush3.bf16.msra.mxu0 %v365_v27 }
  0x4b   :  { %367 = vmatprep.subr.bf16.mxu0 %v508_v0 }
  0x4c   :  { %390 = vmatpush3.bf16.msra.mxu1 %v389_v36 }
  0x4d   :  { %391 = vmatprep.subr.bf16.mxu1 %v508_v0 }
  0x4e   :  { %369 = vmatpush3.bf16.msra.mxu0 %v368_v33 }
  0x4f   :  { %370 = vmatprep.subr.bf16.mxu0 %v508_v0 }
  0x50   :  { %393 = vmatpush3.bf16.msra.mxu1 %v392_v42 }
  0x51   :  { %394 = vmatprep.subr.bf16.mxu1 %v508_v0 }
  0x52   :  { %372 = vmatpush3.bf16.msra.mxu0 %v371_v39 }
  0x53   :  { %373 = vmatprep.subr.bf16.mxu0 %v508_v0 }
  0x54   :  { %396 = vmatpush3.bf16.msra.mxu1 %v395_v46 }
  0x55   :  { %397 = vmatprep.subr.bf16.mxu1 %v508_v0 }
  0x56   :  { %375 = vmatpush3.bf16.msra.mxu0 %v374_v45 }
  0x58   :  { %399 = vmatpush3.bf16.msra.mxu1 %v398_v50 }
  0x59   :  { %315 = vmatmul.mubr.f32.vlgmr.msra.gmra.mrb[0].mxu0 %v54_v47 }
 0x12c   :  { %v137_v51 = vpop.f32.mrb[0].mxu0 }
 0x12d   :  { %v141_v52 = vmul.f32 0.01, %v137_v51  ;;  %v316_v53 = vpop.f32.mrb[1].mxu0 }
 0x12f   :  { %v142_v54 = vmax.f32 %v137_v51, %v141_v52 }
 0x131   :  { %350 = vmatmul.mubr.f32.vlgmr.msra.gmra.mrb[0].mxu1 %v142_v54 }
 0x204   :  { %v225_v55 = vpop.f32.mrb[0].mxu1 }
 0x205   :  { %v229_v56 = vmul.f32 0.01, %v225_v55  ;;  %v351_v57 = vpop.f32.mrb[1].mxu1 }
 0x207   :  { %v230_v58 = vmax.f32 %v225_v55, %v229_v56 }
 0x209   :  { %231 = vst [vmem:[#allocation8] sm:$0xff] %v230_v58 }
 0x20a   :  { %486 = shalt.err (!%p483_p0)
}
 0x20b   :  { %s487_s25 = scalar_lea.hbm %s605_s3, 128 }
 0x20c   :  { %p488_p1 = scmp.ne.s32.totalorder %s605_s3, %s487_s25  ;;  %p491_p2 = scmp.lt.u32.totalorder %s487_s25, %s605_s3 }
 0x20e   :  { %p493_p3 = pnand %p491_p2, %p488_p1 }
 0x210   :  { %496 = shalt.err (!%p493_p3)
}
 0x211   :  { %241 = dma.vmem_to_hbm [thread:$0]  %s239_s21, 128, %s605_s3, [#allocation4]  }
 0x212   :  { %501 = dma.done.wait [#allocation4], 128  }
 0x213   :  { %502 = vsyncadd [#allocation4], 4294967168 }
 0x214   :  { %245 = vsyncpa [#allocation3], 1 }
 0x215   :  { %246 = vsyncpa [#allocation6], 1 }
 0x216   :  { %247 = vsyncpa [#allocation4], 1 }

</bundles_post_ra>
